<compile_context>
chip_gen: v6e
topology: v6e:2x2x1
jax: 0.10.0
libtpu: 0.0.40
codegen_flags: <defaults>
</compile_context>

<pallas_src>
import math

import jax
import jax.numpy as jnp
from jax.experimental import pallas as pl
from jax.experimental.pallas import tpu as pltpu

LANES = 128
SUBLANES = 8
H_PAD = LANES           # hidden/output feature dims (24, 32, 6) padded to 128


def _round_up(n, m):
    return (n + m - 1) // m * m


# ----------------------------------------------------------------------------
# Kernel: fused 3-layer MLP on one (TB, d_in) batch tile.
# ----------------------------------------------------------------------------
def dqn_kernel(x_ref, w1_ref, b1_ref, w2_ref, b2_ref, w3_ref, b3_ref, o_ref):
    # x arrives as f32 straight from HBM (no wrapper pad/cast copy); round to
    # bf16 for the MXU, accumulate in f32, add biases in f32.
    x = x_ref[...].astype(jnp.bfloat16)                               # (TB, d_in)
    h1 = jnp.dot(x, w1_ref[...], preferred_element_type=jnp.float32)
    h1 = jnp.maximum(h1 + b1_ref[...], 0.0)                           # (TB, 128)
    h2 = jnp.dot(h1.astype(jnp.bfloat16), w2_ref[...],
                 preferred_element_type=jnp.float32)
    h2 = jnp.maximum(h2 + b2_ref[...], 0.0)                           # (TB, 128)
    o = jnp.dot(h2.astype(jnp.bfloat16), w3_ref[...],
                preferred_element_type=jnp.float32)
    o_ref[...] = o + b3_ref[...]                                      # (TB, 128)


# ----------------------------------------------------------------------------
# One-time parameter preparation (hoisted out of the per-step forward).
# Weights are stored transposed: (in_features, out_features).
# ----------------------------------------------------------------------------
def prepare_params(params):
    def pad_w(w, rows):
        wp = jnp.zeros((rows, H_PAD), jnp.bfloat16)
        return wp.at[:w.shape[0], :w.shape[1]].set(w.astype(jnp.bfloat16))

    def pad_b(b):
        bp = jnp.zeros((1, H_PAD), jnp.float32)
        return bp.at[:, :b.shape[1]].set(b.astype(jnp.float32))

    d_in = params["w1"].shape[0]
    return {
        "w1": pad_w(params["w1"], d_in),   "b1": pad_b(params["b1"]),
        "w2": pad_w(params["w2"], H_PAD),  "b2": pad_b(params["b2"]),
        "w3": pad_w(params["w3"], H_PAD),  "b3": pad_b(params["b3"]),
    }


# ----------------------------------------------------------------------------
# Tile-size selection.
# ----------------------------------------------------------------------------
def _vmem_aware_block_b(d_in, requested):
    """Cap the batch tile so double-buffered x/out tiles + resident weights +
    f32 temps fit comfortably in this generation's VMEM (v7x: 64 MiB)."""
    try:
        vmem_cap = pltpu.get_tpu_info().vmem_capacity_bytes
    except Exception:
        vmem_cap = 64 * 1024 * 1024                      # conservative (v7x)
    budget = min(int(vmem_cap * 0.6), 40 * 1024 * 1024)
    fixed = 2 * ((d_in * H_PAD + 2 * H_PAD * H_PAD) * 2 + 3 * H_PAD * 4)
    per_row = (2 * d_in * 4          # x tile, f32, double-buffered
               + 2 * H_PAD * 4       # output tile, f32, double-buffered
               + 2 * H_PAD * 4)      # h1/h2 f32 temps
    tb_max = max(SUBLANES, ((budget - fixed) // per_row) // SUBLANES * SUBLANES)
    return min(requested, tb_max)


def _pick_tile(B, block_b):
    """Balanced tile so the last grid step is mostly full (no ~2x blow-up
    when B is just above block_b)."""
    num_tiles = max(1, pl.cdiv(B, block_b))
    if num_tiles == 1:
        return B                      # block dim == full array dim: always legal
    tb = _round_up(pl.cdiv(B, num_tiles), SUBLANES)
    return min(tb, _round_up(B, SUBLANES))


# ----------------------------------------------------------------------------
# Forward pass.
# ----------------------------------------------------------------------------
def dqn_forward(x_nchw, padded_params, *, block_b=4096):
    """x_nchw: (B, 3, H, W) float32; padded_params: output of prepare_params.
    Returns (B, 6) float32 Q-values."""
    B = x_nchw.shape[0]
    d_in = math.prod(x_nchw.shape[1:])
    x_flat = x_nchw.reshape(B, d_in)          # free bitcast, no pad/cast copy

    block_b = _vmem_aware_block_b(d_in, block_b)
    TB = _pick_tile(B, block_b)
    grid = (pl.cdiv(B, TB),)

    w1, b1 = padded_params["w1"], padded_params["b1"]
    w2, b2 = padded_params["w2"], padded_params["b2"]
    w3, b3 = padded_params["w3"], padded_params["b3"]

    resident = lambda i: (0, 0)               # weights/biases stay VMEM-resident

    flops = 2 * B * (d_in * 24 + 24 * 32 + 32 * 6)
    bytes_accessed = (
        B * d_in * 4                                   # x stream (f32, read once)
        + (d_in * H_PAD + 2 * H_PAD * H_PAD) * 2       # weights (bf16)
        + 3 * H_PAD * 4                                # biases (f32)
        + B * H_PAD * 4                                # output (f32)
    )

    out = pl.pallas_call(
        dqn_kernel,
        out_shape=jax.ShapeDtypeStruct((B, H_PAD), jnp.float32),
        grid=grid,
        in_specs=[
            pl.BlockSpec((TB, d_in), lambda i: (i, 0)),   # x: f32, streamed per tile
            pl.BlockSpec((d_in, H_PAD), resident),        # w1
            pl.BlockSpec((1, H_PAD), resident),           # b1
            pl.BlockSpec((H_PAD, H_PAD), resident),       # w2
            pl.BlockSpec((1, H_PAD), resident),           # b2
            pl.BlockSpec((H_PAD, H_PAD), resident),       # w3
            pl.BlockSpec((1, H_PAD), resident),           # b3
        ],
        out_specs=pl.BlockSpec((TB, H_PAD), lambda i: (i, 0)),
        compiler_params=pltpu.CompilerParams(
            dimension_semantics=("parallel",),
            vmem_limit_bytes=48 * 1024 * 1024,
        ),
        cost_estimate=pl.CostEstimate(
            flops=flops, transcendentals=0, bytes_accessed=bytes_accessed),
    )(x_flat, w1, b1, w2, b2, w3, b3)

    # Padded columns 6..127 are exactly zero (zero-padded w3/b3); slice them
    # off so no caller can argmax over a padded lane. Rows are already exact.
    return out[:, :6]


# ----------------------------------------------------------------------------
# Init + pure-JAX reference (mirrors the kernel's bf16 matmul-input rounding).
# ----------------------------------------------------------------------------
def init_params(key, img_h, img_w):
    """nn.Linear-style init U(-1/sqrt(fan_in), 1/sqrt(fan_in));
    weights stored transposed: (in_features, out_features)."""
    d_in = img_h * img_w * 3
    dims = [(d_in, 24), (24, 32), (32, 6)]
    params = {}
    for idx, (fi, fo) in enumerate(dims, start=1):
        key, kw, kb = jax.random.split(key, 3)
        bound = 1.0 / (fi ** 0.5)
        params[f"w{idx}"] = jax.random.uniform(
            kw, (fi, fo), jnp.float32, minval=-bound, maxval=bound)
        params[f"b{idx}"] = jax.random.uniform(
            kb, (1, fo), jnp.float32, minval=-bound, maxval=bound)
    return params


def dqn_reference(x_nchw, params):
    B = x_nchw.shape[0]
    rd = lambda a: a.astype(jnp.bfloat16).astype(jnp.float32)
    hp = jax.lax.Precision.HIGHEST
    t = rd(x_nchw.reshape(B, -1))
    t = jnp.maximum(jnp.dot(t, rd(params["w1"]), precision=hp) + params["b1"], 0.0)
    t = jnp.maximum(jnp.dot(rd(t), rd(params["w2"]), precision=hp) + params["b2"], 0.0)
    return jnp.dot(rd(t), rd(params["w3"]), precision=hp) + params["b3"]


if __name__ == "__main__":
    img_h, img_w = 16, 16
    batch = 2   # small demo shape; kernel tiles/scales to large batches

    key = jax.random.PRNGKey(0)
    key, kx = jax.random.split(key)
    x = jax.random.normal(kx, (batch, 3, img_h, img_w), jnp.float32)
    params = init_params(key, img_h, img_w)
    padded_params = prepare_params(params)   # one-time, outside the hot path

    out = dqn_forward(x, padded_params)
    out = jax.block_until_ready(out)

    ref = dqn_reference(x, params)
    assert out.shape == (batch, 6)
    assert jnp.allclose(out, ref, atol=1e-3, rtol=1e-3), "mismatch vs reference"

    print("KERNEL_OK")
</pallas_src>

<mosaic_0001>
module attributes {stable_mosaic.version = 11 : i64} {
  func.func @dqn_kernel(%arg0: i32, %arg1: memref<2x768xf32, #tpu.memory_space<vmem>>, %arg2: memref<768x128xbf16, #tpu.memory_space<vmem>>, %arg3: memref<1x128xf32, #tpu.memory_space<vmem>>, %arg4: memref<128x128xbf16, #tpu.memory_space<vmem>>, %arg5: memref<1x128xf32, #tpu.memory_space<vmem>>, %arg6: memref<128x128xbf16, #tpu.memory_space<vmem>>, %arg7: memref<1x128xf32, #tpu.memory_space<vmem>>, %arg8: memref<2x128xf32, #tpu.memory_space<vmem>>) attributes {dimension_semantics = [#tpu.dimension_semantics<parallel>], iteration_bounds = array<i64: 1>, scalar_prefetch = 0 : i64, scratch_operands = 0 : i64, tpu.core_type = #tpu.core_type<tc>, window_params = [{transform_indices = @transform_0, window_bounds = array<i64: 2, 768>}, {pipeline_mode = #tpu.pipeline_mode<synchronous>, transform_indices = @transform_1, window_bounds = array<i64: 768, 128>}, {pipeline_mode = #tpu.pipeline_mode<synchronous>, transform_indices = @transform_2, window_bounds = array<i64: 1, 128>}, {pipeline_mode = #tpu.pipeline_mode<synchronous>, transform_indices = @transform_3, window_bounds = array<i64: 128, 128>}, {pipeline_mode = #tpu.pipeline_mode<synchronous>, transform_indices = @transform_4, window_bounds = array<i64: 1, 128>}, {pipeline_mode = #tpu.pipeline_mode<synchronous>, transform_indices = @transform_5, window_bounds = array<i64: 128, 128>}, {pipeline_mode = #tpu.pipeline_mode<synchronous>, transform_indices = @transform_6, window_bounds = array<i64: 1, 128>}, {transform_indices = @transform_7, window_bounds = array<i64: 2, 128>}]} {
    %c0 = arith.constant 0 : index
    %c0_0 = arith.constant 0 : index
    %0 = vector.load %arg1[%c0, %c0_0] : memref<2x768xf32, #tpu.memory_space<vmem>>, vector<2x768xf32>
    %1 = arith.truncf %0 : vector<2x768xf32> to vector<2x768xbf16>
    %c0_1 = arith.constant 0 : index
    %c0_2 = arith.constant 0 : index
    %2 = vector.load %arg2[%c0_1, %c0_2] : memref<768x128xbf16, #tpu.memory_space<vmem>>, vector<768x128xbf16>
    %cst = arith.constant dense<0.000000e+00> : vector<2x128xf32>
    %3 = tpu.matmul %1, %2, %cst {dimension_numbers = #tpu.dot_dimension_numbers<[1], [0], [0], [1], [0, 0, 1, 1], [], []>} : vector<2x768xbf16>, vector<768x128xbf16>, vector<2x128xf32> -> vector<2x128xf32>
    %c0_3 = arith.constant 0 : index
    %c0_4 = arith.constant 0 : index
    %4 = vector.load %arg3[%c0_3, %c0_4] : memref<1x128xf32, #tpu.memory_space<vmem>>, vector<1x128xf32>
    %5 = vector.broadcast %4 : vector<1x128xf32> to vector<2x128xf32>
    %6 = arith.addf %3, %5 : vector<2x128xf32>
    %cst_5 = arith.constant 0.000000e+00 : f32
    %7 = vector.broadcast %cst_5 : f32 to vector<2x128xf32>
    %8 = arith.maximumf %6, %7 : vector<2x128xf32>
    %9 = arith.truncf %8 : vector<2x128xf32> to vector<2x128xbf16>
    %c0_6 = arith.constant 0 : index
    %c0_7 = arith.constant 0 : index
    %10 = vector.load %arg4[%c0_6, %c0_7] : memref<128x128xbf16, #tpu.memory_space<vmem>>, vector<128x128xbf16>
    %cst_8 = arith.constant dense<0.000000e+00> : vector<2x128xf32>
    %11 = tpu.matmul %9, %10, %cst_8 {dimension_numbers = #tpu.dot_dimension_numbers<[1], [0], [0], [1], [0, 0, 1, 1], [], []>} : vector<2x128xbf16>, vector<128x128xbf16>, vector<2x128xf32> -> vector<2x128xf32>
    %c0_9 = arith.constant 0 : index
    %c0_10 = arith.constant 0 : index
    %12 = vector.load %arg5[%c0_9, %c0_10] : memref<1x128xf32, #tpu.memory_space<vmem>>, vector<1x128xf32>
    %13 = vector.broadcast %12 : vector<1x128xf32> to vector<2x128xf32>
    %14 = arith.addf %11, %13 : vector<2x128xf32>
    %cst_11 = arith.constant 0.000000e+00 : f32
    %15 = vector.broadcast %cst_11 : f32 to vector<2x128xf32>
    %16 = arith.maximumf %14, %15 : vector<2x128xf32>
    %17 = arith.truncf %16 : vector<2x128xf32> to vector<2x128xbf16>
    %c0_12 = arith.constant 0 : index
    %c0_13 = arith.constant 0 : index
    %18 = vector.load %arg6[%c0_12, %c0_13] : memref<128x128xbf16, #tpu.memory_space<vmem>>, vector<128x128xbf16>
    %cst_14 = arith.constant dense<0.000000e+00> : vector<2x128xf32>
    %19 = tpu.matmul %17, %18, %cst_14 {dimension_numbers = #tpu.dot_dimension_numbers<[1], [0], [0], [1], [0, 0, 1, 1], [], []>} : vector<2x128xbf16>, vector<128x128xbf16>, vector<2x128xf32> -> vector<2x128xf32>
    %c0_15 = arith.constant 0 : index
    %c0_16 = arith.constant 0 : index
    %20 = vector.load %arg7[%c0_15, %c0_16] : memref<1x128xf32, #tpu.memory_space<vmem>>, vector<1x128xf32>
    %21 = vector.broadcast %20 : vector<1x128xf32> to vector<2x128xf32>
    %22 = arith.addf %19, %21 : vector<2x128xf32>
    %c0_17 = arith.constant 0 : index
    %c0_18 = arith.constant 0 : index
    %23 = vector.load %arg8[%c0_17, %c0_18] : memref<2x128xf32, #tpu.memory_space<vmem>>, vector<2x128xf32>
    tpu.vector_store %arg8[%c0_17, %c0_18], %22 {strides = array<i32>} : memref<2x128xf32, #tpu.memory_space<vmem>>, vector<2x128xf32>,
    return
  }
  func.func @transform_0(%arg0: i32) -> (i32, i32) {
    %c0_i32 = arith.constant 0 : i32
    %c0_i32_0 = arith.constant 0 : i32
    return %arg0, %c0_i32 : i32, i32
  }
  func.func @transform_1(%arg0: i32) -> (i32, i32) {
    %c0_i32 = arith.constant 0 : i32
    %c0_i32_0 = arith.constant 0 : i32
    %c0_i32_1 = arith.constant 0 : i32
    return %c0_i32, %c0_i32_0 : i32, i32
  }
  func.func @transform_2(%arg0: i32) -> (i32, i32) {
    %c0_i32 = arith.constant 0 : i32
    %c0_i32_0 = arith.constant 0 : i32
    %c0_i32_1 = arith.constant 0 : i32
    return %c0_i32, %c0_i32_0 : i32, i32
  }
  func.func @transform_3(%arg0: i32) -> (i32, i32) {
    %c0_i32 = arith.constant 0 : i32
    %c0_i32_0 = arith.constant 0 : i32
    %c0_i32_1 = arith.constant 0 : i32
    return %c0_i32, %c0_i32_0 : i32, i32
  }
  func.func @transform_4(%arg0: i32) -> (i32, i32) {
    %c0_i32 = arith.constant 0 : i32
    %c0_i32_0 = arith.constant 0 : i32
    %c0_i32_1 = arith.constant 0 : i32
    return %c0_i32, %c0_i32_0 : i32, i32
  }
  func.func @transform_5(%arg0: i32) -> (i32, i32) {
    %c0_i32 = arith.constant 0 : i32
    %c0_i32_0 = arith.constant 0 : i32
    %c0_i32_1 = arith.constant 0 : i32
    return %c0_i32, %c0_i32_0 : i32, i32
  }
  func.func @transform_6(%arg0: i32) -> (i32, i32) {
    %c0_i32 = arith.constant 0 : i32
    %c0_i32_0 = arith.constant 0 : i32
    %c0_i32_1 = arith.constant 0 : i32
    return %c0_i32, %c0_i32_0 : i32, i32
  }
  func.func @transform_7(%arg0: i32) -> (i32, i32) {
    %c0_i32 = arith.constant 0 : i32
    %c0_i32_0 = arith.constant 0 : i32
    return %arg0, %c0_i32 : i32, i32
  }
}

</mosaic_0001>

<bundles_post_ra>
// kernel: tpu_custom_call.1
= control target key start
LH: loop header
LB: loop body
LE: loop exit
PB: predicated region body
PF: predicated region fallthrough
CT: control target
= control target key end

     0   :  { %12 = vsyncpa [#allocation3], 0  ;;  %s1353_s0 = inlined_call_operand.hbm [shape: f32[2,768], index: 0, kind: input, shape index: {}]   ;;  %s1354_s1 = inlined_call_operand.hbm [shape: bf16[768,128], index: 1, kind: input, shape index: {}]   ;;  %s1355_s2 = inlined_call_operand.vmem [shape: f32[1,128], index: 2, kind: input, shape index: {}]   ;;  %s1356_s3 = inlined_call_operand.hbm [shape: bf16[128,128], index: 3, kind: input, shape index: {}]   ;;  %s1357_s4 = inlined_call_operand.vmem [shape: f32[1,128], index: 4, kind: input, shape index: {}]   ;;  %s1358_s5 = inlined_call_operand.hbm [shape: bf16[128,128], index: 5, kind: input, shape index: {}]   ;;  %s1359_s6 = inlined_call_operand.vmem [shape: f32[1,128], index: 6, kind: input, shape index: {}]   ;;  %s1360_s7 = inlined_call_operand.hbm [shape: f32[2,128], index: 7, kind: output, shape index: {}]  }
   0x1   :  { %13 = vsyncpa [#allocation6], 0 }
   0x2   :  { %14 = vsyncpa [#allocation9], 0 }
   0x3   :  { %15 = vsyncpa [#allocation4], 0  ;;  %s1252_s24 = smov [#allocation5]  }
   0x4   :  { %s31_s25 = sshll.u32 %s1252_s24, 4  ;;  %s32_s25 = int_to_ptr.vmem [resolvable:$true] %s31_s25 }
   0x5   :  { %s1152_s26 = scalar_lea.vmem %s32_s25, 6144  ;;  %p1157_p1 = scmp.lt.s32.totalorder %s32_s25, %s32_s25 }
   0x6   :  { %p1153_p0 = scmp.ne.s32.totalorder %s32_s25, %s1152_s26  ;;  %p1158_p2 = scmp.lt.s32.totalorder %s1152_s26, %s1152_s26 }
   0x8   :  { %p1159_p3 = por %p1158_p2, %p1157_p1 }
   0xa   :  { %p1160_p4 = pnand %p1159_p3, %p1153_p0 }
   0xc   :  { %1163 = shalt.err (!%p1160_p4)
}
   0xd   :  { %s1253_s27 = smov 64   ;;  %s1254_s28 = smov 4  }
   0xe   :  { %37 = dma.hbm_to_vmem [thread:$0]  %s1354_s1, 6144, %s32_s25, [#allocation6], %s1253_s27, %s1253_s27, %s1254_s28  }
   0xf   :  { %s1255_s8 = smov [#allocation2]   ;;  %s1256_s10 = smov [#allocation7]  }
  0x10   :  { %s22_s9 = sshll.u32 %s1255_s8, 4  ;;  %s45_s11 = sshll.u32 %s1256_s10, 4  ;;  %s23_s9 = int_to_ptr.vmem [resolvable:$true] %s22_s9  ;;  %s46_s11 = int_to_ptr.vmem [resolvable:$true] %s45_s11 }
  0x11   :  { %s1172_s12 = scalar_lea.vmem %s23_s9, 192  ;;  %p1177_p6 = scmp.lt.s32.totalorder %s23_s9, %s23_s9 }
  0x12   :  { %p1173_p5 = scmp.ne.s32.totalorder %s23_s9, %s1172_s12  ;;  %p1178_p7 = scmp.lt.s32.totalorder %s1172_s12, %s1172_s12 }
  0x14   :  { %p1179_p8 = por %p1178_p7, %p1177_p6 }
  0x16   :  { %p1180_p9 = pnand %p1179_p8, %p1173_p5 }
  0x18   :  { %1183 = shalt.err (!%p1180_p9)
}
  0x19   :  { %25 = dma.hbm_to_vmem [thread:$0]  %s1353_s0, 192, %s23_s9, [#allocation3]  }
  0x1a   :  { %s1192_s15 = scalar_lea.vmem %s46_s11, 1024  ;;  %p1197_p11 = scmp.lt.s32.totalorder %s46_s11, %s46_s11 }
  0x1b   :  { %p1193_p10 = scmp.ne.s32.totalorder %s46_s11, %s1192_s15  ;;  %p1198_p12 = scmp.lt.s32.totalorder %s1192_s15, %s1192_s15 }
  0x1d   :  { %p1199_p13 = por %p1198_p12, %p1197_p11 }
  0x1f   :  { %p1200_p0 = pnand %p1199_p13, %p1193_p10 }
  0x21   :  { %1203 = shalt.err (!%p1200_p0)
}
  0x22   :  { %51 = dma.hbm_to_vmem [thread:$0]  %s1356_s3, 1024, %s46_s11, [#allocation6], %s1253_s27, %s1253_s27, %s1254_s28  }
  0x23   :  { %s1257_s17 = smov [#allocation8]  }
  0x24   :  { %s59_s18 = sshll.u32 %s1257_s17, 4  ;;  %s60_s18 = int_to_ptr.vmem [resolvable:$true] %s59_s18 }
  0x25   :  { %s1212_s19 = scalar_lea.vmem %s60_s18, 1024  ;;  %p1217_p2 = scmp.lt.s32.totalorder %s60_s18, %s60_s18 }
  0x26   :  { %p1213_p1 = scmp.ne.s32.totalorder %s60_s18, %s1212_s19  ;;  %p1218_p3 = scmp.lt.s32.totalorder %s1212_s19, %s1212_s19 }
  0x28   :  { %p1219_p4 = por %p1218_p3, %p1217_p2 }
  0x2a   :  { %p1220_p5 = pnand %p1219_p4, %p1213_p1 }
  0x2c   :  { %1223 = shalt.err (!%p1220_p5)
}
  0x2d   :  { %65 = dma.hbm_to_vmem [thread:$0]  %s1358_s5, 1024, %s60_s18, [#allocation9], %s1253_s27, %s1253_s27, %s1254_s28  }
  0x2e   :  { %1244 = dma.done.wait [#allocation3], 192  }
  0x2f   :  { %1245 = vsyncadd [#allocation3], 4294967104 }
  0x30   :  { %1246 = dma.done.wait [#allocation6], 7168  }
  0x31   :  { %1247 = vsyncadd [#allocation6], 4294960128 }
  0x32   :  { %1248 = dma.done.wait [#allocation9], 1024  }
  0x33   :  { %1249 = vsyncadd [#allocation9], 4294966272  ;;  %v1079_v0 = vld [vmem:[#allocation5 + $0x78] sm:$0xff]   ;;  %v1083_v4 = vld [vmem:[#allocation5 + $0x70] sm:$0xff]   ;;  %v1258_v21 = vmov 1983009808   ;;  %v89_v23 = vlaneseq }
  0x34   :  { %v1080_v1 = vld [vmem:[#allocation5 + $0x38] sm:$0xff]   ;;  %945 = vmatprep.subr.bf16.mxu0 %v1079_v0  ;;  %v1084_v5 = vld [vmem:[#allocation5 + $0x30] sm:$0xff]   ;;  %v1087_v8 = vld [vmem:[#allocation5 + $0x68] sm:$0xff]   ;;  %v87_v22 = vunpack.c.l.s4 %v1258_v21  ;;  %vm1260_vm0 = vmmov 0   ;;  %s1261_s24 = smov [#allocation10]  }
  0x35   :  { %v1081_v2 = vld [vmem:[#allocation5 + $0xf8] sm:$0xff]   ;;  %946 = vmatpush3.bf16.msra.mxu0 %v1080_v1  ;;  %v1085_v6 = vld [vmem:[#allocation5 + $0xf0] sm:$0xff]   ;;  %v1088_v9 = vld [vmem:[#allocation5 + $0x28] sm:$0xff]   ;;  %v90_v29 = vshrl.u32 %v89_v23, 7  ;;  %s866_s25 = sshll.u32 %s1261_s24, 4  ;;  %s867_s25 = int_to_ptr.vmem [resolvable:$true] %s866_s25 }
  0x36   :  { %v1082_v3 = vld [vmem:[#allocation5 + $0xb8] sm:$0xff]   ;;  %967 = vmatprep.subr.bf16.mxu1 %v1081_v2  ;;  %947 = vmatprep.subr.bf16.mxu0 %v1083_v4  ;;  %v1086_v7 = vld [vmem:[#allocation5 + $0xb0] sm:$0xff]   ;;  %v1089_v10 = vld [vmem:[#allocation5 + $0xe8] sm:$0xff]   ;;  %v88_v28 = vunpack.c.0.s8 %v87_v22  ;;  %p1229_p7 = scmp.lt.s32.totalorder %s867_s25, %s867_s25 }
  0x37   :  { %968 = vmatpush3.bf16.msra.mxu1 %v1082_v3  ;;  %v1090_v11 = vld [vmem:[#allocation5 + $0xa8] sm:$0xff]   ;;  %v1091_v12 = vld [vmem:[#allocation5 + $0x60] sm:$0xff]   ;;  %v1095_v16 = vld [vmem:[#allocation5 + $0x58] sm:$0xff]  }
  0x38   :  { %969 = vmatprep.subr.bf16.mxu1 %v1085_v6  ;;  %v1092_v13 = vld [vmem:[#allocation5 + $0x20] sm:$0xff]   ;;  %v1096_v17 = vld [vmem:[#allocation5 + $0x18] sm:$0xff]   ;;  %v1099_v20 = vld [vmem:[#allocation5 + $0x50] sm:$0xff]   ;;  %v91_v34 = vsub.s32 %v88_v28, %v90_v29 }
  0x39   :  { %948 = vmatpush3.bf16.msra.mxu0 %v1084_v5  ;;  %v1093_v14 = vld [vmem:[#allocation5 + $0xe0] sm:$0xff]   ;;  %v1097_v18 = vld [vmem:[#allocation5 + $0xd8] sm:$0xff]   ;;  %v1100_v24 = vld [vmem:[#allocation5 + $0x10] sm:$0xff]   ;;  %v1259_v5 = vmov 0.0  }
  0x3a   :  { %949 = vmatprep.subr.bf16.mxu0 %v1087_v8  ;;  %v1094_v15 = vld [vmem:[#allocation5 + $0xa0] sm:$0xff]   ;;  %v1098_v19 = vld [vmem:[#allocation5 + $0x98] sm:$0xff]   ;;  %v1101_v25 = vld [vmem:[#allocation5 + $0xd0] sm:$0xff]  }
  0x3b   :  { %970 = vmatpush3.bf16.msra.mxu1 %v1086_v7  ;;  %v1102_v26 = vld [vmem:[#allocation5 + $0x90] sm:$0xff]   ;;  %v1103_v27 = vld [vmem:[#allocation5 + $0x48] sm:$0xff]   ;;  %v1107_v33 = vld [vmem:[#allocation5 + $0x40] sm:$0xff]  }
  0x3c   :  { %971 = vmatprep.subr.bf16.mxu1 %v1089_v10  ;;  %v1104_v30 = vld [vmem:[#allocation5 + $0x8] sm:$0xff]   ;;  %v1108_v35 = vld [vmem:[#allocation5] sm:$0xff]   ;;  %v81_v37 = vld [vmem:[#allocation2] sm:$0xff] }
  0x3d   :  { %950 = vmatpush3.bf16.msra.mxu0 %v1088_v9  ;;  %v1105_v31 = vld [vmem:[#allocation5 + $0xc8] sm:$0xff]   ;;  %v1109_v36 = vld [vmem:[#allocation5 + $0xc0] sm:$0xff]   ;;  %v92_v38 = vrot.slane %v81_v37, %v91_v34  ;;  %v85_v40 = vcombine.high %v81_v37, %v81_v37  ;;  %v1111_v41 = vld [vmem:[#allocation5 + $0x178] sm:$0xff]  }
  0x3e   :  { %951 = vmatprep.subr.bf16.mxu0 %v1091_v12  ;;  %v1106_v32 = vld [vmem:[#allocation5 + $0x88] sm:$0xff]   ;;  %v1110_v39 = vld [vmem:[#allocation5 + $0x80] sm:$0xff]   ;;  %v1113_v47 = vld [vmem:[#allocation5 + $0x138] sm:$0xff]  }
  0x3f   :  { %972 = vmatpush3.bf16.msra.mxu1 %v1090_v11  ;;  %v100_v42 = vcombine.high %v92_v38, %v92_v38  ;;  %v99_v43 = vrot.slane %v85_v40, %v91_v34  ;;  %v116_v44 = vpack.c.bf16 %v92_v38, %v92_v38  ;;  %v1114_v49 = vld [vmem:[#allocation5 + $0x170] sm:$0xff]   ;;  %v1116_v52 = vld [vmem:[#allocation5 + $0x168] sm:$0xff]   ;;  %v1118_v54 = vld [vmem:[#allocation5 + $0x160] sm:$0xff]  }
  0x40   :  { %973 = vmatprep.subr.bf16.mxu1 %v1093_v14  ;;  %v1115_v51 = vld [vmem:[#allocation5 + $0x130] sm:$0xff]   ;;  %v1117_v53 = vld [vmem:[#allocation5 + $0x128] sm:$0xff]   ;;  %v1119_v55 = vld [vmem:[#allocation5 + $0x120] sm:$0xff]  }
  0x41   :  { %952 = vmatpush3.bf16.msra.mxu0 %v1092_v13  ;;  %v117_v45 = vpack.c.bf16 %v100_v42, %v100_v42  ;;  %v101_v46 = vcombine.high %v99_v43, %v99_v43  ;;  %v118_v48 = vpack.c.bf16 %v99_v43, %v99_v43  ;;  %v1120_v56 = vld [vmem:[#allocation5 + $0x158] sm:$0xff]   ;;  %v1122_v60 = vld [vmem:[#allocation5 + $0x150] sm:$0xff]   ;;  %v1124_v63 = vld [vmem:[#allocation5 + $0x148] sm:$0xff]  }
  0x42   :  { %953 = vmatprep.subr.bf16.mxu0 %v1095_v16  ;;  %v877_v57 = vld.sshfl [vmem:[#allocation2 + $0x8] sm:$0x33 pattern:$0x76325410]  ;;  %v1123_v62 = vld [vmem:[#allocation5 + $0x110] sm:$0xff]   ;;  %v1125_v0 = vld [vmem:[#allocation5 + $0x108] sm:$0xff]  }
  0x43   :  { %974 = vmatpush3.bf16.msra.mxu1 %v1094_v15  ;;  %545 = vmatprep.mubr.bf16.mxu0 %v117_v45  ;;  %v119_v50 = vpack.c.bf16 %v101_v46, %v101_v46  ;;  %v109_v58 = vcombine.high %v877_v57, %v877_v57  ;;  %v1121_v59 = vld [vmem:[#allocation5 + $0x118] sm:$0xff]   ;;  %v1126_v1 = vld [vmem:[#allocation5 + $0x140] sm:$0xff]   ;;  %v120_v3 = vpack.c.bf16 %v877_v57, %v877_v57  ;;  %v1129_v6 = vld [vmem:[#allocation7 + $0x30] sm:$0xff]  }
  0x44   :  { %975 = vmatprep.subr.bf16.mxu1 %v1097_v18  ;;  %v1127_v2 = vld [vmem:[#allocation5 + $0x100] sm:$0xff]   ;;  %v1128_v4 = vld [vmem:[#allocation7 + $0x38] sm:$0xff]   ;;  %v1130_v7 = vld [vmem:[#allocation7 + $0x28] sm:$0xff]  }
  0x45   :  { %954 = vmatpush3.bf16.msra.mxu0 %v1096_v17  ;;  %585 = vmatprep.mubr.bf16.mxu1 %v119_v50  ;;  %v121_v61 = vpack.c.bf16 %v109_v58, %v109_v58  ;;  %v1131_v8 = vld [vmem:[#allocation7 + $0x20] sm:$0xff]   ;;  %v1132_v9 = vld [vmem:[#allocation7 + $0x18] sm:$0xff]   ;;  %v1133_v10 = vld [vmem:[#allocation7 + $0x10] sm:$0xff]  }
  0x46   :  { %955 = vmatprep.subr.bf16.mxu0 %v1099_v20  ;;  %v1134_v11 = vld [vmem:[#allocation7 + $0x8] sm:$0xff]   ;;  %v1135_v12 = vld [vmem:[#allocation7] sm:$0xff]   ;;  %v1136_v13 = vld [vmem:[#allocation8 + $0x38] sm:$0xff]  }
  0x47   :  { %976 = vmatpush3.bf16.msra.mxu1 %v1098_v19  ;;  %v1137_v14 = vld [vmem:[#allocation8 + $0x30] sm:$0xff]   ;;  %v1138_v15 = vld [vmem:[#allocation8 + $0x28] sm:$0xff]   ;;  %v1139_v16 = vld [vmem:[#allocation8 + $0x20] sm:$0xff]  }
  0x48   :  { %977 = vmatprep.subr.bf16.mxu1 %v1101_v25  ;;  %v1140_v17 = vld [vmem:[#allocation8 + $0x18] sm:$0xff]   ;;  %v1141_v18 = vld [vmem:[#allocation8 + $0x10] sm:$0xff]   ;;  %v1142_v40 = vld [vmem:[#allocation8 + $0x8] sm:$0xff]  }
  0x49   :  { %956 = vmatpush3.bf16.msra.mxu0 %v1100_v24  ;;  %v878_v28 = vld [vmem:[%s1355_s2] ss:$0 sm:$0xff] }
  0x4a   :  { %957 = vmatprep.subr.bf16.mxu0 %v1103_v27  ;;  %v927_v42 = vld [vmem:[%s1357_s4] ss:$0 sm:$0xff]  ;;  %s1224_s4 = scalar_lea.vmem %s867_s25, 32 }
  0x4b   :  { %978 = vmatpush3.bf16.msra.mxu1 %v1102_v26  ;;  %v936_v50 = vld [vmem:[%s1359_s6] ss:$0 sm:$0xff]  ;;  %p1225_p6 = scmp.ne.s32.totalorder %s867_s25, %s1224_s4  ;;  %p1230_p8 = scmp.lt.s32.totalorder %s1224_s4, %s1224_s4 }
  0x4c   :  { %979 = vmatprep.subr.bf16.mxu1 %v1105_v31 }
  0x4d   :  { %958 = vmatpush3.bf16.msra.mxu0 %v1104_v30  ;;  %p1231_p9 = por %p1230_p8, %p1229_p7 }
  0x4e   :  { %959 = vmatprep.subr.bf16.mxu0 %v1107_v33 }
  0x4f   :  { %980 = vmatpush3.bf16.msra.mxu1 %v1106_v32  ;;  %p1232_p10 = pnand %p1231_p9, %p1225_p6 }
  0x50   :  { %981 = vmatprep.subr.bf16.mxu1 %v1109_v36 }
  0x51   :  { %960 = vmatpush3.bf16.msra.mxu0 %v1108_v35 }
  0x52   :  { %989 = vmatprep.subr.bf16.mxu0 %v1111_v41  ;;  %v1143_v41 = vld [vmem:[#allocation8] sm:$0xff]  }
  0x53   :  { %982 = vmatpush3.bf16.msra.mxu1 %v1110_v39 }
  0x54   :  { %546 = vmatmul.mubr.bf16.vlgmr.msra.gmra.mxu0 %v116_v44  ;;  %1029 = vmatprep.subr.bf16.mxu1 %v1259_v5 }
  0x55   :  { %990 = vmatpush3.bf16.msra.mxu0 %v1113_v47  ;;  %625 = vmatprep.mubr.bf16.mxu0 %v121_v61 }
  0x56   :  { %586 = vmatmul.mubr.bf16.vlgmr.msra.gmra.mxu1 %v118_v48  ;;  %991 = vmatprep.subr.bf16.mxu0 %v1114_v49 }
  0x57   :  { %1030 = vmatpush3.bf16.msra.mxu1 %v1128_v4  ;;  %1045 = vmatprep.mubr.msk.bf16.mxu1 %vm1260_vm0, %v1259_v5 }
  0x58   :  { %1031 = vmatprep.subr.bf16.mxu1 %v1259_v5 }
  0x59   :  { %992 = vmatpush3.bf16.msra.mxu0 %v1115_v51 }
  0x5a   :  { %993 = vmatprep.subr.bf16.mxu0 %v1116_v52 }
  0x5b   :  { %1032 = vmatpush3.bf16.msra.mxu1 %v1129_v6 }
  0x5c   :  { %1033 = vmatprep.subr.bf16.mxu1 %v1259_v5 }
  0x5d   :  { %994 = vmatpush3.bf16.msra.mxu0 %v1117_v53 }
  0x5e   :  { %995 = vmatprep.subr.bf16.mxu0 %v1118_v54 }
  0x5f   :  { %1034 = vmatpush3.bf16.msra.mxu1 %v1130_v7 }
  0x60   :  { %1035 = vmatprep.subr.bf16.mxu1 %v1259_v5 }
  0x61   :  { %996 = vmatpush3.bf16.msra.mxu0 %v1119_v55 }
  0x62   :  { %997 = vmatprep.subr.bf16.mxu0 %v1120_v56 }
  0x63   :  { %1036 = vmatpush3.bf16.msra.mxu1 %v1131_v8 }
  0x64   :  { %1037 = vmatprep.subr.bf16.mxu1 %v1259_v5 }
  0x65   :  { %998 = vmatpush3.bf16.msra.mxu0 %v1121_v59 }
  0x66   :  { %999 = vmatprep.subr.bf16.mxu0 %v1122_v60 }
  0x67   :  { %1038 = vmatpush3.bf16.msra.mxu1 %v1132_v9 }
  0x68   :  { %1039 = vmatprep.subr.bf16.mxu1 %v1259_v5 }
  0x69   :  { %1000 = vmatpush3.bf16.msra.mxu0 %v1123_v62 }
  0x6a   :  { %1001 = vmatprep.subr.bf16.mxu0 %v1124_v63 }
  0x6b   :  { %1040 = vmatpush3.bf16.msra.mxu1 %v1133_v10 }
  0x6c   :  { %1041 = vmatprep.subr.bf16.mxu1 %v1259_v5 }
  0x6d   :  { %1002 = vmatpush3.bf16.msra.mxu0 %v1125_v0 }
  0x6e   :  { %1003 = vmatprep.subr.bf16.mxu0 %v1126_v1 }
  0x6f   :  { %1042 = vmatpush3.bf16.msra.mxu1 %v1134_v11 }
  0x70   :  { %1043 = vmatprep.subr.bf16.mxu1 %v1259_v5 }
  0x71   :  { %1004 = vmatpush3.bf16.msra.mxu0 %v1127_v2 }
  0x72   :  { %1049 = vmatprep.subr.bf16.mxu0 %v1259_v5 }
  0x73   :  { %1044 = vmatpush3.bf16.msra.mxu1 %v1135_v12 }
  0x74   :  { %626 = vmatmul.mubr.bf16.vlgmr.msra.gmra.mxu0 %v120_v3 }
  0x75   :  { %1065 = vmatprep.mubr.msk.bf16.mxu0 %vm1260_vm0, %v1259_v5  ;;  %1050 = vmatpush3.bf16.msra.mxu0 %v1136_v13 }
  0x76   :  { %1051 = vmatprep.subr.bf16.mxu0 %v1259_v5 }
  0x79   :  { %1052 = vmatpush3.bf16.msra.mxu0 %v1137_v14 }
  0x7a   :  { %1053 = vmatprep.subr.bf16.mxu0 %v1259_v5 }
  0x7d   :  { %1054 = vmatpush3.bf16.msra.mxu0 %v1138_v15 }
  0x7e   :  { %1055 = vmatprep.subr.bf16.mxu0 %v1259_v5 }
  0x81   :  { %1056 = vmatpush3.bf16.msra.mxu0 %v1139_v16 }
  0x82   :  { %1057 = vmatprep.subr.bf16.mxu0 %v1259_v5 }
  0x85   :  { %1058 = vmatpush3.bf16.msra.mxu0 %v1140_v17 }
  0x86   :  { %1059 = vmatprep.subr.bf16.mxu0 %v1259_v5 }
  0x89   :  { %1060 = vmatpush3.bf16.msra.mxu0 %v1141_v18 }
  0x8a   :  { %1061 = vmatprep.subr.bf16.mxu0 %v1259_v5 }
  0x8d   :  { %1062 = vmatpush3.bf16.msra.mxu0 %v1142_v40 }
  0x8e   :  { %1063 = vmatprep.subr.bf16.mxu0 %v1259_v5 }
  0x91   :  { %1064 = vmatpush3.bf16.msra.mxu0 %v1143_v41 }
 0x114   :  { %v961_v19 = vpop.f32.mrf.mxu0 }
 0x116   :  { %v962_v20 = vpop.f32.mrf.mxu0  ;;  %v983_v21 = vpop.f32.mrf.mxu1 }
 0x117   :  { %v963_v27 = vadd.f32 %v962_v20, %v961_v19 }
 0x118   :  { %v964_v22 = vpop.f32.mrf.mxu0  ;;  %v984_v23 = vpop.f32.mrf.mxu1 }
 0x119   :  { %v548_v29 = vadd.f32 %v963_v27, %v878_v28  ;;  %v985_v30 = vadd.f32 %v984_v23, %v983_v21 }
 0x11a   :  { %v965_v24 = vpop.f32.mrf.mxu0  ;;  %v986_v25 = vpop.f32.mrf.mxu1 }
 0x11b   :  { %v588_v33 = vadd.f32 %v985_v30, %v548_v29 }
 0x11c   :  { %v987_v26 = vpop.f32.mrf.mxu1 }
 0x134   :  { %v1005_v31 = vpop.f32.mrf.mxu0 }
 0x136   :  { %v1006_v32 = vpop.f32.mrf.mxu0 }
 0x137   :  { %v1007_v34 = vadd.f32 %v1006_v32, %v1005_v31 }
 0x138   :  { %v1008_v35 = vpop.f32.mrf.mxu0 }
 0x139   :  { %v628_v36 = vadd.f32 %v1007_v34, %v588_v33 }
 0x13a   :  { %v1009_v37 = vpop.f32.mrf.mxu0 }
 0x13b   :  { %v633_v38 = vmax.f32 %v628_v36, 0.0 }
 0x13d   :  { %v634_v39 = vpack.c.bf16 %v633_v38, %v633_v38 }
 0x13f   :  { %1046 = vmatmul.mubr.bf16.vlgmr.msra.gmra.mxu1 %v634_v39 }
 0x1ff   :  { %v740_v43 = vpop.f32.mrf.mxu1 }
 0x200   :  { %v741_v44 = vadd.f32 %v927_v42, %v740_v43 }
 0x201   :  { %v1047_v45 = vpop.f32.mrf.mxu1 }
 0x202   :  { %v746_v46 = vmax.f32 %v741_v44, 0.0 }
 0x203   :  { %v743_v47 = vpop.f32.mrf.mxu1 }
 0x204   :  { %v747_v48 = vpack.c.bf16 %v746_v46, %v746_v46 }
 0x205   :  { %v1048_v49 = vpop.f32.mrf.mxu1 }
 0x206   :  { %1066 = vmatmul.mubr.bf16.vlgmr.msra.gmra.mxu0 %v747_v48 }
 0x2c6   :  { %v853_v51 = vpop.f32.mrf.mxu0 }
 0x2c7   :  { %v854_v52 = vadd.f32 %v936_v50, %v853_v51 }
 0x2c8   :  { %v1067_v53 = vpop.f32.mrf.mxu0 }
 0x2c9   :  { %859 = vst [vmem:[#allocation10] sm:$0x3] %v854_v52 }
 0x2ca   :  { %v856_v54 = vpop.f32.mrf.mxu0 }
 0x2cb   :  { %1235 = shalt.err (!%p1232_p10)
}
 0x2cc   :  { %869 = dma.vmem_to_hbm [thread:$0]  %s867_s25, 32, %s1360_s7, [#allocation4]   ;;  %v1068_v55 = vpop.f32.mrf.mxu0 }
 0x2cd   :  { %1250 = dma.done.wait [#allocation4], 32  }
 0x2ce   :  { %1251 = vsyncadd [#allocation4], 4294967264 }
 0x2cf   :  { %873 = vsyncpa [#allocation3], 1 }
 0x2d0   :  { %874 = vsyncpa [#allocation6], 1 }
 0x2d1   :  { %875 = vsyncpa [#allocation9], 1 }
 0x2d2   :  { %876 = vsyncpa [#allocation4], 1 }

</bundles_post_ra>
